<compile_context>
chip_gen: v7x
topology: tpu7x:2x2x1
jax: 0.10.0
libtpu: 0.0.40
codegen_flags: <defaults>
</compile_context>

<pallas_src>
import math
import jax
import jax.numpy as jnp
from jax.experimental import pallas as pl
from jax.experimental.pallas import tpu as pltpu

# ----------------------------- config ---------------------------------------
USER_NUM = 24
ITEM_NUM = 40
HIDDEN_DIM = 32
GNN_LAYERS = 2            # len(eval(args.gnn_layer)) in the reference code
N_NODES = USER_NUM + ITEM_NUM


# ----------------------------- fused Pallas kernel ---------------------------
def fused_gcn_kernel(emb0_ref, r_ref, w_ref, stages_ref):
    """All four GCN behavior stages, fully resident in VMEM.

    emb0_ref   : (N, D)      cat(user_emb, item_emb)
    r_ref      : (4, N, N)   packed dense adjacencies R0..R3
    w_ref      : (3, D, D)   packed weights [W_u, W_i, WW_u]
    stages_ref : (N, 4*D)    lane-dense output slab [ now | pv | fav | cart ]
    """
    inv = 1.0 / float(GNN_LAYERS + 1)

    def propagate(r, x):
        # (X + R@X + ... + R^L@X) / (L+1), f32 accumulation on the MXU.
        acc = x
        prop = x
        for _ in range(GNN_LAYERS):
            prop = jnp.dot(r, prop, preferred_element_type=jnp.float32)
            acc = acc + prop
        return acc * inv

    # Combined weights: tiny 32x32 dots, independent of the R chain, so the
    # scheduler can overlap them with the propagation recurrence on the MXU.
    w1 = w_ref[0]                                                      # W_u
    w2 = jnp.dot(w1, w_ref[1], preferred_element_type=jnp.float32)     # W_u @ W_i
    w3 = jnp.dot(w2, w_ref[2], preferred_element_type=jnp.float32)     # W_u @ W_i @ WW_u

    # Weight application commutes with propagation:
    #   propagate(R, X @ W) == propagate(R, X) @ W
    # so the serial MXU chain is only the 8 propagation matmuls; the three
    # weight applications are hoisted to the end (independent, pipeline
    # back-to-back through the MXU).
    a0 = propagate(r_ref[0], emb0_ref[...])   # now  (identity weight -> no matmul)
    a1 = propagate(r_ref[1], a0)
    a2 = propagate(r_ref[2], a1)
    a3 = propagate(r_ref[3], a2)

    pv = jnp.dot(a1, w1, preferred_element_type=jnp.float32)
    fav = jnp.dot(a2, w2, preferred_element_type=jnp.float32)
    cart = jnp.dot(a3, w3, preferred_element_type=jnp.float32)

    # Single lane-dense (64, 128) unmasked store.
    stages_ref[...] = jnp.concatenate([a0, pv, fav, cart], axis=-1)


def fused_gcn_forward(emb0, r_stack, w_stack):
    N, D = emb0.shape
    vmem = pl.BlockSpec(memory_space=pltpu.MemorySpace.VMEM)
    # TODO(synk): R* are dense stand-ins; the PyTorch module uses sparse COO
    # adjacencies (torch.sparse) which have no direct dense-MXU Pallas analog.
    stages = pl.pallas_call(
        fused_gcn_kernel,
        out_shape=jax.ShapeDtypeStruct((N, 4 * D), jnp.float32),
        in_specs=[vmem, vmem, vmem],
        out_specs=vmem,
    )(emb0, r_stack, w_stack)
    return stages


# ----------------------------- parameter init -------------------------------
def xavier_uniform(key, shape):
    fan_in, fan_out = shape[0], shape[1]
    bound = math.sqrt(6.0 / (fan_in + fan_out))
    return jax.random.uniform(key, shape, jnp.float32, -bound, bound)


def init_params(key):
    ks = jax.random.split(key, 6)
    return {
        "user_embeddings": xavier_uniform(ks[0], (USER_NUM, HIDDEN_DIM)),
        "item_embeddings": xavier_uniform(ks[1], (ITEM_NUM, HIDDEN_DIM)),
        "W_u":  xavier_uniform(ks[2], (HIDDEN_DIM, HIDDEN_DIM)),
        "W_i":  xavier_uniform(ks[3], (HIDDEN_DIM, HIDDEN_DIM)),
        "WW_u": xavier_uniform(ks[4], (HIDDEN_DIM, HIDDEN_DIM)),
        "WW_i": xavier_uniform(ks[5], (HIDDEN_DIM, HIDDEN_DIM)),  # unused in fwd
    }


def make_adjacency(key, n):
    # Synthetic dense stand-in for the normalized sparse adjacency.
    a = jax.random.uniform(key, (n, n), jnp.float32)
    a = (a > 0.8).astype(jnp.float32)           # sparse-ish binary adjacency
    deg = jnp.maximum(a.sum(axis=1, keepdims=True), 1.0)
    return a / deg                               # row-normalized


# ----------------------------- model forward --------------------------------
@jax.jit
def my_model_forward(params, R0, R1, R2, R3):
    D = HIDDEN_DIM
    emb0 = jnp.concatenate(
        [params["user_embeddings"], params["item_embeddings"]], axis=0)
    r_stack = jnp.stack([R0, R1, R2, R3], axis=0)                 # (4, N, N)
    w_stack = jnp.stack(
        [params["W_u"], params["W_i"], params["WW_u"]], axis=0)   # (3, D, D)

    stages = fused_gcn_forward(emb0, r_stack, w_stack)

    emb_now = stages[:, 0 * D:1 * D]
    emb_pv = stages[:, 1 * D:2 * D]
    emb_fav = stages[:, 2 * D:3 * D]
    emb_cart = stages[:, 3 * D:4 * D]

    total = emb_now + emb_pv + emb_fav + emb_cart
    total_u, total_i = total[:USER_NUM], total[USER_NUM:]
    ulist = [emb_now[:USER_NUM], emb_pv[:USER_NUM],
             emb_fav[:USER_NUM], emb_cart[:USER_NUM]]
    ilist = [emb_now[USER_NUM:], emb_pv[USER_NUM:],
             emb_fav[USER_NUM:], emb_cart[USER_NUM:]]
    return total_u, total_i, ulist, ilist


# ----------------------------- reference check ------------------------------
def reference_forward(params, R0, R1, R2, R3):
    def stage(R, XW):
        acc, prop = XW, XW
        for _ in range(GNN_LAYERS):
            prop = R @ prop
            acc = acc + prop
        return acc / (GNN_LAYERS + 1)

    emb0 = jnp.concatenate(
        [params["user_embeddings"], params["item_embeddings"]], axis=0)
    now = stage(R0, emb0)
    pv = stage(R1, now @ params["W_u"])
    fav = stage(R2, pv @ params["W_i"])
    cart = stage(R3, fav @ params["WW_u"])
    total = now + pv + fav + cart
    return total[:USER_NUM], total[USER_NUM:], now, pv, fav, cart


# ----------------------------- main ------------------------------------------
if __name__ == "__main__":
    key = jax.random.PRNGKey(0)
    k_params, k_r0, k_r1, k_r2, k_r3 = jax.random.split(key, 5)

    params = init_params(k_params)
    R0 = make_adjacency(k_r0, N_NODES)
    R1 = make_adjacency(k_r1, N_NODES)
    R2 = make_adjacency(k_r2, N_NODES)
    R3 = make_adjacency(k_r3, N_NODES)

    total_u, total_i, ulist, ilist = my_model_forward(params, R0, R1, R2, R3)
    jax.block_until_ready((total_u, total_i, ulist, ilist))

    # sanity check against a pure-JAX reference
    ref_u, ref_i, ref_now, ref_pv, ref_fav, ref_cart = reference_forward(
        params, R0, R1, R2, R3)
    assert total_u.shape == (USER_NUM, HIDDEN_DIM)
    assert total_i.shape == (ITEM_NUM, HIDDEN_DIM)
    assert len(ulist) == 4 and len(ilist) == 4
    assert jnp.allclose(total_u, ref_u, atol=1e-4, rtol=1e-4)
    assert jnp.allclose(total_i, ref_i, atol=1e-4, rtol=1e-4)
    assert jnp.allclose(ulist[0], ref_now[:USER_NUM], atol=1e-4, rtol=1e-4)
    assert jnp.allclose(ulist[1], ref_pv[:USER_NUM], atol=1e-4, rtol=1e-4)
    assert jnp.allclose(ilist[2], ref_fav[USER_NUM:], atol=1e-4, rtol=1e-4)
    assert jnp.allclose(ilist[3], ref_cart[USER_NUM:], atol=1e-4, rtol=1e-4)

    print("KERNEL_OK")
</pallas_src>

<mosaic_0001>
module attributes {stable_mosaic.version = 11 : i64} {
  func.func @fused_gcn_kernel(%arg0: memref<64x32xf32, #tpu.memory_space<vmem>>, %arg1: memref<4x64x64xf32, #tpu.memory_space<vmem>>, %arg2: memref<3x32x32xf32, #tpu.memory_space<vmem>>, %arg3: memref<64x128xf32, #tpu.memory_space<vmem>>) attributes {dimension_semantics = [], scalar_prefetch = 0 : i64, scratch_operands = 0 : i64, tpu.core_type = #tpu.core_type<tc>} {
    %c0 = arith.constant 0 : index
    %c0_0 = arith.constant 0 : index
    %c0_1 = arith.constant 0 : index
    %0 = vector.load %arg2[%c0, %c0_0, %c0_1] : memref<3x32x32xf32, #tpu.memory_space<vmem>>, vector<1x32x32xf32>
    %1 = vector.shape_cast %0 : vector<1x32x32xf32> to vector<32x32xf32>
    %c1 = arith.constant 1 : index
    %c0_2 = arith.constant 0 : index
    %c0_3 = arith.constant 0 : index
    %2 = vector.load %arg2[%c1, %c0_2, %c0_3] : memref<3x32x32xf32, #tpu.memory_space<vmem>>, vector<1x32x32xf32>
    %3 = vector.shape_cast %2 : vector<1x32x32xf32> to vector<32x32xf32>
    %cst = arith.constant dense<0.000000e+00> : vector<32x32xf32>
    %4 = tpu.matmul %1, %3, %cst {dimension_numbers = #tpu.dot_dimension_numbers<[1], [0], [0], [1], [0, 0, 1, 1], [], []>} : vector<32x32xf32>, vector<32x32xf32>, vector<32x32xf32> -> vector<32x32xf32>
    %c2 = arith.constant 2 : index
    %c0_4 = arith.constant 0 : index
    %c0_5 = arith.constant 0 : index
    %5 = vector.load %arg2[%c2, %c0_4, %c0_5] : memref<3x32x32xf32, #tpu.memory_space<vmem>>, vector<1x32x32xf32>
    %6 = vector.shape_cast %5 : vector<1x32x32xf32> to vector<32x32xf32>
    %cst_6 = arith.constant dense<0.000000e+00> : vector<32x32xf32>
    %7 = tpu.matmul %4, %6, %cst_6 {dimension_numbers = #tpu.dot_dimension_numbers<[1], [0], [0], [1], [0, 0, 1, 1], [], []>} : vector<32x32xf32>, vector<32x32xf32>, vector<32x32xf32> -> vector<32x32xf32>
    %c0_7 = arith.constant 0 : index
    %c0_8 = arith.constant 0 : index
    %c0_9 = arith.constant 0 : index
    %8 = vector.load %arg1[%c0_7, %c0_8, %c0_9] : memref<4x64x64xf32, #tpu.memory_space<vmem>>, vector<1x64x64xf32>
    %9 = vector.shape_cast %8 : vector<1x64x64xf32> to vector<64x64xf32>
    %c0_10 = arith.constant 0 : index
    %c0_11 = arith.constant 0 : index
    %10 = vector.load %arg0[%c0_10, %c0_11] : memref<64x32xf32, #tpu.memory_space<vmem>>, vector<64x32xf32>
    %cst_12 = arith.constant dense<0.000000e+00> : vector<64x32xf32>
    %11 = tpu.matmul %9, %10, %cst_12 {dimension_numbers = #tpu.dot_dimension_numbers<[1], [0], [0], [1], [0, 0, 1, 1], [], []>} : vector<64x64xf32>, vector<64x32xf32>, vector<64x32xf32> -> vector<64x32xf32>
    %12 = arith.addf %10, %11 : vector<64x32xf32>
    %cst_13 = arith.constant dense<0.000000e+00> : vector<64x32xf32>
    %13 = tpu.matmul %9, %11, %cst_13 {dimension_numbers = #tpu.dot_dimension_numbers<[1], [0], [0], [1], [0, 0, 1, 1], [], []>} : vector<64x64xf32>, vector<64x32xf32>, vector<64x32xf32> -> vector<64x32xf32>
    %14 = arith.addf %12, %13 : vector<64x32xf32>
    %cst_14 = arith.constant 0.333333343 : f32
    %15 = vector.broadcast %cst_14 : f32 to vector<64x32xf32>
    %16 = arith.mulf %14, %15 : vector<64x32xf32>
    %c1_15 = arith.constant 1 : index
    %c0_16 = arith.constant 0 : index
    %c0_17 = arith.constant 0 : index
    %17 = vector.load %arg1[%c1_15, %c0_16, %c0_17] : memref<4x64x64xf32, #tpu.memory_space<vmem>>, vector<1x64x64xf32>
    %18 = vector.shape_cast %17 : vector<1x64x64xf32> to vector<64x64xf32>
    %cst_18 = arith.constant dense<0.000000e+00> : vector<64x32xf32>
    %19 = tpu.matmul %18, %16, %cst_18 {dimension_numbers = #tpu.dot_dimension_numbers<[1], [0], [0], [1], [0, 0, 1, 1], [], []>} : vector<64x64xf32>, vector<64x32xf32>, vector<64x32xf32> -> vector<64x32xf32>
    %20 = arith.addf %16, %19 : vector<64x32xf32>
    %cst_19 = arith.constant dense<0.000000e+00> : vector<64x32xf32>
    %21 = tpu.matmul %18, %19, %cst_19 {dimension_numbers = #tpu.dot_dimension_numbers<[1], [0], [0], [1], [0, 0, 1, 1], [], []>} : vector<64x64xf32>, vector<64x32xf32>, vector<64x32xf32> -> vector<64x32xf32>
    %22 = arith.addf %20, %21 : vector<64x32xf32>
    %cst_20 = arith.constant 0.333333343 : f32
    %23 = vector.broadcast %cst_20 : f32 to vector<64x32xf32>
    %24 = arith.mulf %22, %23 : vector<64x32xf32>
    %c2_21 = arith.constant 2 : index
    %c0_22 = arith.constant 0 : index
    %c0_23 = arith.constant 0 : index
    %25 = vector.load %arg1[%c2_21, %c0_22, %c0_23] : memref<4x64x64xf32, #tpu.memory_space<vmem>>, vector<1x64x64xf32>
    %26 = vector.shape_cast %25 : vector<1x64x64xf32> to vector<64x64xf32>
    %cst_24 = arith.constant dense<0.000000e+00> : vector<64x32xf32>
    %27 = tpu.matmul %26, %24, %cst_24 {dimension_numbers = #tpu.dot_dimension_numbers<[1], [0], [0], [1], [0, 0, 1, 1], [], []>} : vector<64x64xf32>, vector<64x32xf32>, vector<64x32xf32> -> vector<64x32xf32>
    %28 = arith.addf %24, %27 : vector<64x32xf32>
    %cst_25 = arith.constant dense<0.000000e+00> : vector<64x32xf32>
    %29 = tpu.matmul %26, %27, %cst_25 {dimension_numbers = #tpu.dot_dimension_numbers<[1], [0], [0], [1], [0, 0, 1, 1], [], []>} : vector<64x64xf32>, vector<64x32xf32>, vector<64x32xf32> -> vector<64x32xf32>
    %30 = arith.addf %28, %29 : vector<64x32xf32>
    %cst_26 = arith.constant 0.333333343 : f32
    %31 = vector.broadcast %cst_26 : f32 to vector<64x32xf32>
    %32 = arith.mulf %30, %31 : vector<64x32xf32>
    %c3 = arith.constant 3 : index
    %c0_27 = arith.constant 0 : index
    %c0_28 = arith.constant 0 : index
    %33 = vector.load %arg1[%c3, %c0_27, %c0_28] : memref<4x64x64xf32, #tpu.memory_space<vmem>>, vector<1x64x64xf32>
    %34 = vector.shape_cast %33 : vector<1x64x64xf32> to vector<64x64xf32>
    %cst_29 = arith.constant dense<0.000000e+00> : vector<64x32xf32>
    %35 = tpu.matmul %34, %32, %cst_29 {dimension_numbers = #tpu.dot_dimension_numbers<[1], [0], [0], [1], [0, 0, 1, 1], [], []>} : vector<64x64xf32>, vector<64x32xf32>, vector<64x32xf32> -> vector<64x32xf32>
    %36 = arith.addf %32, %35 : vector<64x32xf32>
    %cst_30 = arith.constant dense<0.000000e+00> : vector<64x32xf32>
    %37 = tpu.matmul %34, %35, %cst_30 {dimension_numbers = #tpu.dot_dimension_numbers<[1], [0], [0], [1], [0, 0, 1, 1], [], []>} : vector<64x64xf32>, vector<64x32xf32>, vector<64x32xf32> -> vector<64x32xf32>
    %38 = arith.addf %36, %37 : vector<64x32xf32>
    %cst_31 = arith.constant 0.333333343 : f32
    %39 = vector.broadcast %cst_31 : f32 to vector<64x32xf32>
    %40 = arith.mulf %38, %39 : vector<64x32xf32>
    %cst_32 = arith.constant dense<0.000000e+00> : vector<64x32xf32>
    %41 = tpu.matmul %24, %1, %cst_32 {dimension_numbers = #tpu.dot_dimension_numbers<[1], [0], [0], [1], [0, 0, 1, 1], [], []>} : vector<64x32xf32>, vector<32x32xf32>, vector<64x32xf32> -> vector<64x32xf32>
    %cst_33 = arith.constant dense<0.000000e+00> : vector<64x32xf32>
    %42 = tpu.matmul %32, %4, %cst_33 {dimension_numbers = #tpu.dot_dimension_numbers<[1], [0], [0], [1], [0, 0, 1, 1], [], []>} : vector<64x32xf32>, vector<32x32xf32>, vector<64x32xf32> -> vector<64x32xf32>
    %cst_34 = arith.constant dense<0.000000e+00> : vector<64x32xf32>
    %43 = tpu.matmul %40, %7, %cst_34 {dimension_numbers = #tpu.dot_dimension_numbers<[1], [0], [0], [1], [0, 0, 1, 1], [], []>} : vector<64x32xf32>, vector<32x32xf32>, vector<64x32xf32> -> vector<64x32xf32>
    %44 = tpu.concatenate %16, %41, %42, %43 in 1 : vector<64x32xf32>, vector<64x32xf32>, vector<64x32xf32>, vector<64x32xf32> -> vector<64x128xf32>
    %c0_35 = arith.constant 0 : index
    %c0_36 = arith.constant 0 : index
    %45 = vector.load %arg3[%c0_35, %c0_36] : memref<64x128xf32, #tpu.memory_space<vmem>>, vector<64x128xf32>
    tpu.vector_store %arg3[%c0_35, %c0_36], %44 {strides = array<i32>} : memref<64x128xf32, #tpu.memory_space<vmem>>, vector<64x128xf32>,
    return
  }
}

</mosaic_0001>

<bundles_post_ra>
// kernel: my_model_forward.1
= control target key start
LH: loop header
LB: loop body
LE: loop exit
PB: predicated region body
PF: predicated region fallthrough
CT: control target
= control target key end

     0   :  { %vm23_vm0 = vcmask 261120   ;;  %vm239_vm1 = vcmask 523264   ;;  %s2612_s30 = smov 96   ;;  %vm1798_vm2 = vcmask 785408   ;;  %s3129_s0 = inlined_call_operand.vmem [shape: f32[64,32], index: 0, kind: input, shape index: {}]   ;;  %s3130_s2 = inlined_call_operand.vmem [shape: f32[3,32,32], index: 2, kind: input, shape index: {}]   ;;  %s3131_s1 = inlined_call_operand.vmem [shape: f32[4,64,64], index: 1, kind: input, shape index: {}]   ;;  %s3132_s3 = inlined_call_operand.vmem [shape: f32[64,128], index: 3, kind: output, shape index: {}]  }
   0x1   :  { %v2636_v0 = vld [vmem:[%s3129_s0] sm:$0xff]  ;;  %v2641_v1 = vld [vmem:[%s3129_s0 + $0x8] sm:$0xff]  ;;  %v2646_v2 = vld [vmem:[%s3129_s0 + $0x10] sm:$0xff] }
   0x2   :  { %v2455_v3 = vpack.c.bf16 %v2641_v1, %v2636_v0  ;;  %v2653_v4 = vld [vmem:[%s3129_s0 + $0x18] sm:$0xff]  ;;  %v1819_v5 = vld [vmem:[%s3130_s2 + $0x20] sm:$0xff]  ;;  %v1820_v6 = vld [vmem:[%s3130_s2 + $0x28] sm:$0xff] }
   0x3   :  { %v2459_v7 = vpack.c.bf16 %v2653_v4, %v2646_v2  ;;  %v2439_v8 = vpack.c.bf16 %v1820_v6, %v1819_v5  ;;  %v2666_v9 = vld [vmem:[%s3129_s0 + $0x20] sm:$0xff]  ;;  %v2671_v10 = vld [vmem:[%s3129_s0 + $0x28] sm:$0xff]  ;;  %v1821_v11 = vld [vmem:[%s3130_s2 + $0x30] sm:$0xff] }
   0x4   :  { %2456 = vmatprep.subr.bf16.mxu0 %v2455_v3  ;;  %v1822_v12 = vld [vmem:[%s3130_s2 + $0x38] sm:$0xff]  ;;  %v14_v14 = vld [vmem:[%s3130_s2] sm:$0xff]  ;;  %v15_v15 = vld [vmem:[%s3130_s2 + $0x8] sm:$0xff]  ;;  %v2463_v17 = vpack.c.bf16 %v2671_v10, %v2666_v9 }
   0x5   :  { %2458 = vmatpush3.bf16.msra.mxu0 %v2455_v3  ;;  %2440 = vmatprep.subr.bf16.mxu1 %v2439_v8  ;;  %v2443_v13 = vpack.c.bf16 %v1822_v12, %v1821_v11  ;;  %v223_v16 = vld [vmem:[%s3131_s1] sm:$0xff]  ;;  %v2690_v18 = vpack.c.bf16 %v15_v15, %v14_v14  ;;  %v2695_v19 = vld [vmem:[%s3129_s0 + $0x30] sm:$0xff]  ;;  %v2700_v20 = vld [vmem:[%s3129_s0 + $0x38] sm:$0xff] }
   0x6   :  { %2460 = vmatprep.subr.bf16.mxu0 %v2459_v7  ;;  %2442 = vmatpush3.bf16.msra.mxu1 %v2439_v8  ;;  %v1827_v21 = vld [vmem:[%s3130_s2 + $0x40] sm:$0xff]  ;;  %v1828_v22 = vld [vmem:[%s3130_s2 + $0x48] sm:$0xff]  ;;  %v1829_v23 = vld [vmem:[%s3130_s2 + $0x50] sm:$0xff]  ;;  %v2467_v24 = vpack.c.bf16 %v2700_v20, %v2695_v19 }
   0x7   :  { %2444 = vmatprep.subr.bf16.mxu1 %v2443_v13  ;;  %2135 = vmatprep.mubr.msk.f32.mxu1 %vm23_vm0, %v14_v14  ;;  %v2447_v25 = vpack.c.bf16 %v1828_v22, %v1827_v21  ;;  %v1830_v26 = vld [vmem:[%s3130_s2 + $0x58] sm:$0xff]  ;;  %v2721_v27 = vld [vmem:[%s3130_s2 + $0x10] sm:$0xff]  ;;  %v224_v30 = vld [vmem:[%s3131_s1 + $0x8] sm:$0xff] }
   0x8   :  { %2171 = vmatprep.mubr.msk.f32.mxu0 %vm239_vm1, %v223_v16  ;;  %v2451_v28 = vpack.c.bf16 %v1830_v26, %v1829_v23  ;;  %v2729_v29 = vld [vmem:[%s3130_s2 + $0x18] sm:$0xff]  ;;  %v225_v31 = vld [vmem:[%s3131_s1 + $0x10] sm:$0xff]  ;;  %v227_v33 = vld [vmem:[%s3131_s1 + $0x20] sm:$0xff]  ;;  %s2611_s2 = smov 64  }
   0x9   :  { %2462 = vmatpush3.bf16.msra.mxu0 %v2459_v7  ;;  %v226_v32 = vld [vmem:[%s3131_s1 + $0x18] sm:$0xff]  ;;  %v228_v34 = vld [vmem:[%s3131_s1 + $0x28] sm:$0xff]  ;;  %v229_v35 = vld [vmem:[%s3131_s1 + $0x30] sm:$0xff] }
   0xa   :  { %2464 = vmatprep.subr.bf16.mxu0 %v2463_v17  ;;  %2446 = vmatpush3.bf16.msra.mxu1 %v2443_v13  ;;  %v230_v36 = vld [vmem:[%s3131_s1 + $0x38] sm:$0xff]  ;;  %v1851_v55 = vld [vmem:[%s3131_s1 + $0x40] sm:$0xff] }
   0xb   :  { %2448 = vmatprep.subr.bf16.mxu1 %v2447_v25 }
   0xd   :  { %2466 = vmatpush3.bf16.msra.mxu0 %v2463_v17  ;;  %2136 = vmatmul.mubr.msk.f32.vlgmr.msra.gmra.mrb[0].mxu1 %vm23_vm0, %v15_v15 }
   0xe   :  { %2468 = vmatprep.subr.bf16.mxu0 %v2467_v24  ;;  %2138 = vmatprep.mubr.msk.f32.mxu1 %vm23_vm0, %v2721_v27 }
   0xf   :  { %2450 = vmatpush3.bf16.msra.mxu1 %v2447_v25 }
  0x10   :  { %2452 = vmatprep.subr.bf16.mxu1 %v2451_v28 }
  0x11   :  { %2470 = vmatpush3.bf16.msra.mxu0 %v2467_v24  ;;  %2139 = vmatmul.mubr.msk.f32.gmra.mrb[2].mxu1 %vm23_vm0, %v2729_v29 }
  0x13   :  { %2454 = vmatpush3.bf16.msra.mxu1 %v2451_v28 }
  0x14   :  { %2172 = vmatmul.mubr.msk.f32.vlgmr.msra.gmra.mrb[0].mxu0 %vm239_vm1, %v224_v30 }
  0x15   :  { %2174 = vmatprep.mubr.msk.f32.mxu0 %vm239_vm1, %v225_v31 }
  0x18   :  { %2175 = vmatmul.mubr.msk.f32.gmra.mrb[2].mxu0 %vm239_vm1, %v226_v32 }
  0x19   :  { %2177 = vmatprep.mubr.msk.f32.mxu0 %vm239_vm1, %v227_v33 }
  0x1c   :  { %2178 = vmatmul.mubr.msk.f32.gmra.mrb[4].mxu0 %vm239_vm1, %v228_v34 }
  0x1d   :  { %2180 = vmatprep.mubr.msk.f32.mxu0 %vm239_vm1, %v229_v35 }
  0x20   :  { %2181 = vmatmul.mubr.msk.f32.gmra.mrb[6].mxu0 %vm239_vm1, %v230_v36 }
  0x21   :  { %2227 = vmatprep.mubr.msk.f32.mxu0 %vm239_vm1, %v1851_v55 }
  0xe0   :  { %v2137_v37 = vpop.f32.mrb[0].mxu1 }
  0xe1   :  { %v102_v38 = vpop.f32.mrb[1].mxu1 }
  0xe2   :  { %v2761_v39 = vpack.c.bf16 %v2137_v37, %v102_v38  ;;  %2149 = vmatprep.mubr.msk.f32.mxu1 %vm23_vm0, %v102_v38  ;;  %v1853_v38 = vld [vmem:[%s3131_s1 + $0x50] sm:$0xff] }
  0xe3   :  { %2150 = vmatmul.mubr.msk.f32.vlgmr.msra.gmra.mrb[4].mxu1 %vm23_vm0, %v2137_v37 }
  0xe4   :  { %v2140_v40 = vpop.f32.mrb[2].mxu1 }
  0xe5   :  { %v112_v41 = vpop.f32.mrb[3].mxu1 }
  0xe6   :  { %v2765_v42 = vpack.c.bf16 %v2140_v40, %v112_v41  ;;  %2152 = vmatprep.mubr.msk.f32.mxu1 %vm23_vm0, %v112_v41  ;;  %v1855_v41 = vld [vmem:[%s3131_s1 + $0x60] sm:$0xff] }
  0xe7   :  { %v2173_v43 = vpop.f32.mrb[0].mxu0  ;;  %2153 = vmatmul.mubr.msk.f32.gmra.mrb[6].mxu1 %vm23_vm0, %v2140_v40  ;;  %v1854_v40 = vld [vmem:[%s3131_s1 + $0x58] sm:$0xff] }
  0xe8   :  { %v330_v44 = vpop.f32.mrb[1].mxu0  ;;  %2199 = vmatprep.mubr.msk.f32.mxu1 %vm239_vm1, %v223_v16  ;;  %v370_v62 = vadd.f32 %v2173_v43, %v2641_v1 }
  0xe9   :  { %v2471_v45 = vpack.c.bf16 %v2173_v43, %v330_v44  ;;  %v369_v63 = vadd.f32 %v330_v44, %v2636_v0  ;;  %v1856_v43 = vld [vmem:[%s3131_s1 + $0x68] sm:$0xff]  ;;  %v1857_v44 = vld [vmem:[%s3131_s1 + $0x70] sm:$0xff] }
  0xeb   :  { %v2176_v46 = vpop.f32.mrb[2].mxu0  ;;  %2472 = vmatprep.subr.bf16.mxu1 %v2471_v45 }
  0xec   :  { %v340_v47 = vpop.f32.mrb[3].mxu0  ;;  %2474 = vmatpush3.bf16.msra.mxu1 %v2471_v45  ;;  %v372_v8 = vadd.f32 %v2176_v46, %v2653_v4  ;;  %v1858_v45 = vld [vmem:[%s3131_s1 + $0x78] sm:$0xff] }
  0xed   :  { %v2475_v48 = vpack.c.bf16 %v2176_v46, %v340_v47  ;;  %v371_v12 = vadd.f32 %v340_v47, %v2646_v2 }
  0xef   :  { %v2179_v49 = vpop.f32.mrb[4].mxu0  ;;  %2476 = vmatprep.subr.bf16.mxu1 %v2475_v48 }
  0xf0   :  { %v350_v50 = vpop.f32.mrb[5].mxu0  ;;  %2478 = vmatpush3.bf16.msra.mxu1 %v2475_v48  ;;  %v374_v0 = vadd.f32 %v2179_v49, %v2671_v10 }
  0xf1   :  { %v2479_v51 = vpack.c.bf16 %v2179_v49, %v350_v50  ;;  %v373_v22 = vadd.f32 %v350_v50, %v2666_v9 }
  0xf3   :  { %v2182_v52 = vpop.f32.mrb[6].mxu0  ;;  %2480 = vmatprep.subr.bf16.mxu1 %v2479_v51 }
  0xf4   :  { %v360_v53 = vpop.f32.mrb[7].mxu0  ;;  %2482 = vmatpush3.bf16.msra.mxu1 %v2479_v51  ;;  %v376_v28 = vadd.f32 %v2182_v52, %v2700_v20  ;;  %v1852_v20 = vld [vmem:[%s3131_s1 + $0x48] sm:$0xff] }
  0xf5   :  { %v2483_v54 = vpack.c.bf16 %v2182_v52, %v360_v53  ;;  %v375_v10 = vadd.f32 %v360_v53, %v2695_v19 }
  0xf7   :  { %2484 = vmatprep.subr.bf16.mxu1 %v2483_v54 }
  0xf8   :  { %2486 = vmatpush3.bf16.msra.mxu1 %v2483_v54 }
  0xfb   :  { %2200 = vmatmul.mubr.msk.f32.vlgmr.msra.gmra.mrb[8].mxu1 %vm239_vm1, %v224_v30 }
  0xfc   :  { %2202 = vmatprep.mubr.msk.f32.mxu1 %vm239_vm1, %v225_v31 }
  0xff   :  { %2203 = vmatmul.mubr.msk.f32.gmra.mrb[10].mxu1 %vm239_vm1, %v226_v32 }
 0x100   :  { %2205 = vmatprep.mubr.msk.f32.mxu1 %vm239_vm1, %v227_v33 }
 0x103   :  { %2206 = vmatmul.mubr.msk.f32.gmra.mrb[12].mxu1 %vm239_vm1, %v228_v34 }
 0x104   :  { %2208 = vmatprep.mubr.msk.f32.mxu1 %vm239_vm1, %v229_v35 }
 0x107   :  { %2209 = vmatmul.mubr.msk.f32.gmra.mrb[14].mxu1 %vm239_vm1, %v230_v36 }
 0x108   :  { %2255 = vmatprep.mubr.msk.f32.mxu1 %vm239_vm1, %v1851_v55 }
 0x1b6   :  { %v2151_v56 = vpop.f32.mrb[4].mxu1 }
 0x1b7   :  { %v204_v57 = vpop.f32.mrb[5].mxu1 }
 0x1b8   :  { %v2782_v58 = vpack.c.bf16 %v2151_v56, %v204_v57 }
 0x1ba   :  { %v2154_v59 = vpop.f32.mrb[6].mxu1 }
 0x1bb   :  { %v214_v60 = vpop.f32.mrb[7].mxu1 }
 0x1bc   :  { %v2784_v61 = vpack.c.bf16 %v2154_v59, %v214_v60  ;;  %v1875_v59 = vld [vmem:[%s3131_s1 + $0x80] sm:$0xff] }
 0x1ce   :  { %v2201_v3 = vpop.f32.mrb[8].mxu1 }
 0x1cf   :  { %v483_v5 = vadd.f32 %v2201_v3, %v370_v62  ;;  %v443_v6 = vpop.f32.mrb[9].mxu1 }
 0x1d0   :  { %v482_v7 = vadd.f32 %v443_v6, %v369_v63 }
 0x1d1   :  { %v2789_v11 = vmul.f32 0.33333334, %v483_v5 }
 0x1d2   :  { %v2792_v13 = vmul.f32 0.33333334, %v482_v7  ;;  %v2204_v14 = vpop.f32.mrb[10].mxu1 }
 0x1d3   :  { %v485_v15 = vadd.f32 %v2204_v14, %v372_v8  ;;  %v453_v16 = vpop.f32.mrb[11].mxu1 }
 0x1d4   :  { %v484_v17 = vadd.f32 %v453_v16, %v371_v12  ;;  %v2487_v1 = vpack.c.bf16 %v2789_v11, %v2792_v13 }
 0x1d5   :  { %v2797_v21 = vmul.f32 0.33333334, %v485_v15 }
 0x1d6   :  { %v2800_v4 = vmul.f32 0.33333334, %v484_v17  ;;  %v2207_v23 = vpop.f32.mrb[12].mxu1  ;;  %2488 = vmatprep.subr.bf16.mxu0 %v2487_v1 }
 0x1d7   :  { %v487_v2 = vadd.f32 %v2207_v23, %v374_v0  ;;  %v463_v24 = vpop.f32.mrb[13].mxu1  ;;  %2490 = vmatpush3.bf16.msra.mxu0 %v2487_v1 }
 0x1d8   :  { %v486_v25 = vadd.f32 %v463_v24, %v373_v22  ;;  %v2491_v26 = vpack.c.bf16 %v2797_v21, %v2800_v4 }
 0x1d9   :  { %v2805_v30 = vmul.f32 0.33333334, %v487_v2 }
 0x1da   :  { %v2808_v31 = vmul.f32 0.33333334, %v486_v25  ;;  %v2210_v9 = vpop.f32.mrb[14].mxu1  ;;  %2492 = vmatprep.subr.bf16.mxu0 %v2491_v26 }
 0x1db   :  { %v489_v32 = vadd.f32 %v2210_v9, %v376_v28  ;;  %v473_v33 = vpop.f32.mrb[15].mxu1  ;;  %2494 = vmatpush3.bf16.msra.mxu0 %v2491_v26 }
 0x1dc   :  { %v488_v34 = vadd.f32 %v473_v33, %v375_v10  ;;  %v2495_v35 = vpack.c.bf16 %v2805_v30, %v2808_v31 }
 0x1dd   :  { %v2812_v36 = vmul.f32 0.33333334, %v489_v32 }
 0x1de   :  { %v2814_v37 = vmul.f32 0.33333334, %v488_v34  ;;  %2496 = vmatprep.subr.bf16.mxu0 %v2495_v35 }
 0x1df   :  { %2498 = vmatpush3.bf16.msra.mxu0 %v2495_v35 }
 0x1e0   :  { %v2499_v19 = vpack.c.bf16 %v2812_v36, %v2814_v37 }
 0x1e2   :  { %2500 = vmatprep.subr.bf16.mxu0 %v2499_v19 }
 0x1e3   :  { %2502 = vmatpush3.bf16.msra.mxu0 %v2499_v19 }
 0x1e6   :  { %2228 = vmatmul.mubr.msk.f32.vlgmr.msra.gmra.mrb[8].mxu0 %vm239_vm1, %v1852_v20 }
 0x1e7   :  { %2230 = vmatprep.mubr.msk.f32.mxu0 %vm239_vm1, %v1853_v38 }
 0x1ea   :  { %2231 = vmatmul.mubr.msk.f32.gmra.mrb[10].mxu0 %vm239_vm1, %v1854_v40 }
 0x1eb   :  { %2233 = vmatprep.mubr.msk.f32.mxu0 %vm239_vm1, %v1855_v41 }
 0x1ee   :  { %2234 = vmatmul.mubr.msk.f32.gmra.mrb[12].mxu0 %vm239_vm1, %v1856_v43 }
 0x1ef   :  { %2236 = vmatprep.mubr.msk.f32.mxu0 %vm239_vm1, %v1857_v44 }
 0x1f2   :  { %2237 = vmatmul.mubr.msk.f32.gmra.mrb[14].mxu0 %vm239_vm1, %v1858_v45 }
 0x1f3   :  { %2283 = vmatprep.mubr.msk.f32.mxu0 %vm239_vm1, %v1875_v59 }
 0x2b9   :  { %v2229_v46 = vpop.f32.mrb[8].mxu0 }
 0x2ba   :  { %v597_v47 = vpop.f32.mrb[9].mxu0  ;;  %v637_v60 = vadd.f32 %v2229_v46, %v2789_v11 }
 0x2bb   :  { %v2503_v48 = vpack.c.bf16 %v2229_v46, %v597_v47  ;;  %v636_v62 = vadd.f32 %v597_v47, %v2792_v13  ;;  %v1876_v46 = vld [vmem:[%s3131_s1 + $0x88] sm:$0xff]  ;;  %v1877_v47 = vld [vmem:[%s3131_s1 + $0x90] sm:$0xff] }
 0x2bd   :  { %v2232_v49 = vpop.f32.mrb[10].mxu0  ;;  %2504 = vmatprep.subr.bf16.mxu1 %v2503_v48 }
 0x2be   :  { %v607_v50 = vpop.f32.mrb[11].mxu0  ;;  %2506 = vmatpush3.bf16.msra.mxu1 %v2503_v48  ;;  %v639_v7 = vadd.f32 %v2232_v49, %v2797_v21  ;;  %v1878_v48 = vld [vmem:[%s3131_s1 + $0x98] sm:$0xff] }
 0x2bf   :  { %v2507_v51 = vpack.c.bf16 %v2232_v49, %v607_v50  ;;  %v638_v12 = vadd.f32 %v607_v50, %v2800_v4  ;;  %v1879_v49 = vld [vmem:[%s3131_s1 + $0xa0] sm:$0xff]  ;;  %v1880_v50 = vld [vmem:[%s3131_s1 + $0xa8] sm:$0xff] }
 0x2c1   :  { %v2235_v52 = vpop.f32.mrb[12].mxu0  ;;  %2508 = vmatprep.subr.bf16.mxu1 %v2507_v51 }
 0x2c2   :  { %v617_v53 = vpop.f32.mrb[13].mxu0  ;;  %2510 = vmatpush3.bf16.msra.mxu1 %v2507_v51  ;;  %v641_v22 = vadd.f32 %v2235_v52, %v2805_v30  ;;  %v1881_v51 = vld [vmem:[%s3131_s1 + $0xb0] sm:$0xff] }
 0x2c3   :  { %v2511_v54 = vpack.c.bf16 %v2235_v52, %v617_v53  ;;  %v640_v2 = vadd.f32 %v617_v53, %v2808_v31  ;;  %v1882_v52 = vld [vmem:[%s3131_s1 + $0xb8] sm:$0xff] }
 0x2c5   :  { %v2238_v55 = vpop.f32.mrb[14].mxu0  ;;  %2512 = vmatprep.subr.bf16.mxu1 %v2511_v54 }
 0x2c6   :  { %v627_v56 = vpop.f32.mrb[15].mxu0  ;;  %2514 = vmatpush3.bf16.msra.mxu1 %v2511_v54  ;;  %v643_v32 = vadd.f32 %v2238_v55, %v2812_v36 }
 0x2c7   :  { %v2515_v57 = vpack.c.bf16 %v2238_v55, %v627_v56  ;;  %v642_v34 = vadd.f32 %v627_v56, %v2814_v37 }
 0x2c9   :  { %2516 = vmatprep.subr.bf16.mxu1 %v2515_v57 }
 0x2ca   :  { %2518 = vmatpush3.bf16.msra.mxu1 %v2515_v57 }
 0x2cd   :  { %2256 = vmatmul.mubr.msk.f32.vlgmr.msra.gmra.mrb[16].mxu1 %vm239_vm1, %v1852_v20 }
 0x2ce   :  { %2258 = vmatprep.mubr.msk.f32.mxu1 %vm239_vm1, %v1853_v38 }
 0x2d1   :  { %2259 = vmatmul.mubr.msk.f32.gmra.mrb[18].mxu1 %vm239_vm1, %v1854_v40 }
 0x2d2   :  { %2261 = vmatprep.mubr.msk.f32.mxu1 %vm239_vm1, %v1855_v41 }
 0x2d5   :  { %2262 = vmatmul.mubr.msk.f32.gmra.mrb[20].mxu1 %vm239_vm1, %v1856_v43 }
 0x2d6   :  { %2264 = vmatprep.mubr.msk.f32.mxu1 %vm239_vm1, %v1857_v44 }
 0x2d9   :  { %2265 = vmatmul.mubr.msk.f32.gmra.mrb[22].mxu1 %vm239_vm1, %v1858_v45 }
 0x2da   :  { %2311 = vmatprep.mubr.msk.f32.mxu1 %vm239_vm1, %v1875_v59 }
 0x3a0   :  { %v2257_v63 = vpop.f32.mrb[16].mxu1 }
 0x3a1   :  { %v750_v3 = vadd.f32 %v2257_v63, %v637_v60  ;;  %v710_v5 = vpop.f32.mrb[17].mxu1 }
 0x3a2   :  { %v749_v6 = vadd.f32 %v710_v5, %v636_v62 }
 0x3a3   :  { %v2861_v8 = vmul.f32 0.33333334, %v750_v3 }
 0x3a4   :  { %v2864_v14 = vmul.f32 0.33333334, %v749_v6  ;;  %v2260_v15 = vpop.f32.mrb[18].mxu1 }
 0x3a5   :  { %v752_v16 = vadd.f32 %v2260_v15, %v639_v7  ;;  %v720_v17 = vpop.f32.mrb[19].mxu1  ;;  %v1899_v7 = vld [vmem:[%s3131_s1 + $0xc0] sm:$0xff] }
 0x3a6   :  { %v751_v1 = vadd.f32 %v720_v17, %v638_v12  ;;  %v2519_v0 = vpack.c.bf16 %v2861_v8, %v2864_v14 }
 0x3a7   :  { %v2869_v23 = vmul.f32 0.33333334, %v752_v16 }
 0x3a8   :  { %v2872_v24 = vmul.f32 0.33333334, %v751_v1  ;;  %v2263_v25 = vpop.f32.mrb[20].mxu1  ;;  %2520 = vmatprep.subr.bf16.mxu0 %v2519_v0 }
 0x3a9   :  { %v754_v26 = vadd.f32 %v2263_v25, %v641_v22  ;;  %v730_v28 = vpop.f32.mrb[21].mxu1  ;;  %2522 = vmatpush3.bf16.msra.mxu0 %v2519_v0 }
 0x3aa   :  { %v753_v10 = vadd.f32 %v730_v28, %v640_v2  ;;  %v2523_v9 = vpack.c.bf16 %v2869_v23, %v2872_v24 }
 0x3ab   :  { %v2877_v33 = vmul.f32 0.33333334, %v754_v26 }
 0x3ac   :  { %v2880_v35 = vmul.f32 0.33333334, %v753_v10  ;;  %v2266_v19 = vpop.f32.mrb[22].mxu1  ;;  %2524 = vmatprep.subr.bf16.mxu0 %v2523_v9 }
 0x3ad   :  { %v756_v20 = vadd.f32 %v2266_v19, %v643_v32  ;;  %v740_v38 = vpop.f32.mrb[23].mxu1  ;;  %2526 = vmatpush3.bf16.msra.mxu0 %v2523_v9 }
 0x3ae   :  { %v755_v40 = vadd.f32 %v740_v38, %v642_v34  ;;  %v2527_v41 = vpack.c.bf16 %v2877_v33, %v2880_v35 }
 0x3af   :  { %v2884_v43 = vmul.f32 0.33333334, %v756_v20 }
 0x3b0   :  { %v2886_v44 = vmul.f32 0.33333334, %v755_v40  ;;  %2528 = vmatprep.subr.bf16.mxu0 %v2527_v41 }
 0x3b1   :  { %2530 = vmatpush3.bf16.msra.mxu0 %v2527_v41 }
 0x3b2   :  { %v2531_v45 = vpack.c.bf16 %v2884_v43, %v2886_v44 }
 0x3b4   :  { %2532 = vmatprep.subr.bf16.mxu0 %v2531_v45 }
 0x3b5   :  { %2534 = vmatpush3.bf16.msra.mxu0 %v2531_v45 }
 0x3b8   :  { %2284 = vmatmul.mubr.msk.f32.vlgmr.msra.gmra.mrb[16].mxu0 %vm239_vm1, %v1876_v46 }
 0x3b9   :  { %2286 = vmatprep.mubr.msk.f32.mxu0 %vm239_vm1, %v1877_v47 }
 0x3bc   :  { %2287 = vmatmul.mubr.msk.f32.gmra.mrb[18].mxu0 %vm239_vm1, %v1878_v48 }
 0x3bd   :  { %2289 = vmatprep.mubr.msk.f32.mxu0 %vm239_vm1, %v1879_v49 }
 0x3c0   :  { %2290 = vmatmul.mubr.msk.f32.gmra.mrb[20].mxu0 %vm239_vm1, %v1880_v50 }
 0x3c1   :  { %2292 = vmatprep.mubr.msk.f32.mxu0 %vm239_vm1, %v1881_v51 }
 0x3c4   :  { %2293 = vmatmul.mubr.msk.f32.gmra.mrb[22].mxu0 %vm239_vm1, %v1882_v52 }
 0x3c5   :  { %2339 = vmatprep.mubr.msk.f32.mxu0 %vm239_vm1, %v1899_v7 }
 0x48b   :  { %v2285_v53 = vpop.f32.mrb[16].mxu0 }
 0x48c   :  { %v864_v54 = vpop.f32.mrb[17].mxu0  ;;  %v904_v12 = vadd.f32 %v2285_v53, %v2861_v8 }
 0x48d   :  { %v2535_v55 = vpack.c.bf16 %v2285_v53, %v864_v54  ;;  %v903_v15 = vadd.f32 %v864_v54, %v2864_v14 }
 0x48f   :  { %v2288_v56 = vpop.f32.mrb[18].mxu0  ;;  %2536 = vmatprep.subr.bf16.mxu1 %v2535_v55 }
 0x490   :  { %v874_v57 = vpop.f32.mrb[19].mxu0  ;;  %2538 = vmatpush3.bf16.msra.mxu1 %v2535_v55  ;;  %v906_v22 = vadd.f32 %v2288_v56, %v2869_v23 }
 0x491   :  { %v2539_v59 = vpack.c.bf16 %v2288_v56, %v874_v57  ;;  %v905_v25 = vadd.f32 %v874_v57, %v2872_v24 }
 0x493   :  { %v2291_v60 = vpop.f32.mrb[20].mxu0  ;;  %2540 = vmatprep.subr.bf16.mxu1 %v2539_v59 }
 0x494   :  { %v884_v62 = vpop.f32.mrb[21].mxu0  ;;  %2542 = vmatpush3.bf16.msra.mxu1 %v2539_v59  ;;  %v908_v19 = vadd.f32 %v2291_v60, %v2877_v33 }
 0x495   :  { %v2543_v63 = vpack.c.bf16 %v2291_v60, %v884_v62  ;;  %v907_v38 = vadd.f32 %v884_v62, %v2880_v35 }
 0x497   :  { %v2294_v3 = vpop.f32.mrb[22].mxu0  ;;  %2544 = vmatprep.subr.bf16.mxu1 %v2543_v63 }
 0x498   :  { %v894_v5 = vpop.f32.mrb[23].mxu0  ;;  %2546 = vmatpush3.bf16.msra.mxu1 %v2543_v63  ;;  %v1900_v63 = vld [vmem:[%s3131_s1 + $0xc8] sm:$0xff] }
 0x499   :  { %v2547_v6 = vpack.c.bf16 %v2294_v3, %v894_v5 }
 0x49b   :  { %2548 = vmatprep.subr.bf16.mxu1 %v2547_v6 }
 0x49c   :  { %2550 = vmatpush3.bf16.msra.mxu1 %v2547_v6  ;;  %v1902_v6 = vld [vmem:[%s3131_s1 + $0xd8] sm:$0xff] }
 0x49f   :  { %2312 = vmatmul.mubr.msk.f32.vlgmr.msra.gmra.mrb[24].mxu1 %vm239_vm1, %v1876_v46 }
 0x4a0   :  { %2314 = vmatprep.mubr.msk.f32.mxu1 %vm239_vm1, %v1877_v47 }
 0x4a3   :  { %2315 = vmatmul.mubr.msk.f32.gmra.mrb[26].mxu1 %vm239_vm1, %v1878_v48 }
 0x4a4   :  { %2317 = vmatprep.mubr.msk.f32.mxu1 %vm239_vm1, %v1879_v49  ;;  %v910_v49 = vadd.f32 %v2294_v3, %v2884_v43  ;;  %v1901_v3 = vld [vmem:[%s3131_s1 + $0xd0] sm:$0xff] }
 0x4a7   :  { %2318 = vmatmul.mubr.msk.f32.gmra.mrb[28].mxu1 %vm239_vm1, %v1880_v50 }
 0x4a8   :  { %2320 = vmatprep.mubr.msk.f32.mxu1 %vm239_vm1, %v1881_v51  ;;  %v909_v51 = vadd.f32 %v894_v5, %v2886_v44  ;;  %v2587_v5 = vpack.c.bf16 %v2729_v29, %v2721_v27  ;;  %v1905_v27 = vld [vmem:[%s3131_s1 + $0xf0] sm:$0xff]  ;;  %v1906_v29 = vld [vmem:[%s3131_s1 + $0xf8] sm:$0xff] }
 0x4ab   :  { %2321 = vmatmul.mubr.msk.f32.gmra.mrb[30].mxu1 %vm239_vm1, %v1882_v52 }
 0x4ac   :  { %2367 = vmatprep.mubr.msk.f32.mxu1 %vm239_vm1, %v1899_v7  ;;  %v1903_v7 = vld [vmem:[%s3131_s1 + $0xe0] sm:$0xff] }
 0x572   :  { %v2313_v16 = vpop.f32.mrb[24].mxu1 }
 0x573   :  { %v1017_v17 = vadd.f32 %v2313_v16, %v904_v12  ;;  %v977_v1 = vpop.f32.mrb[25].mxu1 }
 0x574   :  { %v1016_v0 = vadd.f32 %v977_v1, %v903_v15 }
 0x575   :  { %v2933_v2 = vmul.f32 0.33333334, %v1017_v17 }
 0x576   :  { %v2936_v26 = vmul.f32 0.33333334, %v1016_v0  ;;  %v2316_v28 = vpop.f32.mrb[26].mxu1 }
 0x577   :  { %v1019_v10 = vadd.f32 %v2316_v28, %v906_v22  ;;  %v987_v9 = vpop.f32.mrb[27].mxu1 }
 0x578   :  { %v1018_v32 = vadd.f32 %v987_v9, %v905_v25  ;;  %v2551_v34 = vpack.c.bf16 %v2933_v2, %v2936_v26 }
 0x579   :  { %v2941_v20 = vmul.f32 0.33333334, %v1019_v10 }
 0x57a   :  { %v2944_v40 = vmul.f32 0.33333334, %v1018_v32  ;;  %v2319_v41 = vpop.f32.mrb[28].mxu1  ;;  %2552 = vmatprep.subr.bf16.mxu0 %v2551_v34 }
 0x57b   :  { %v1021_v45 = vadd.f32 %v2319_v41, %v908_v19  ;;  %v997_v46 = vpop.f32.mrb[29].mxu1  ;;  %2554 = vmatpush3.bf16.msra.mxu0 %v2551_v34 }
 0x57c   :  { %v1020_v47 = vadd.f32 %v997_v46, %v907_v38  ;;  %v2555_v48 = vpack.c.bf16 %v2941_v20, %v2944_v40 }
 0x57d   :  { %v2949_v50 = vmul.f32 0.33333334, %v1021_v45 }
 0x57e   :  { %v2952_v52 = vmul.f32 0.33333334, %v1020_v47  ;;  %v2322_v53 = vpop.f32.mrb[30].mxu1  ;;  %2556 = vmatprep.subr.bf16.mxu0 %v2555_v48 }
 0x57f   :  { %v1023_v54 = vadd.f32 %v2322_v53, %v910_v49  ;;  %v1007_v55 = vpop.f32.mrb[31].mxu1  ;;  %2558 = vmatpush3.bf16.msra.mxu0 %v2555_v48 }
 0x580   :  { %v1022_v56 = vadd.f32 %v1007_v55, %v909_v51  ;;  %v2559_v57 = vpack.c.bf16 %v2949_v50, %v2952_v52 }
 0x581   :  { %v2956_v59 = vmul.f32 0.33333334, %v1023_v54 }
 0x582   :  { %v2958_v60 = vmul.f32 0.33333334, %v1022_v56  ;;  %2560 = vmatprep.subr.bf16.mxu0 %v2559_v57 }
 0x583   :  { %2562 = vmatpush3.bf16.msra.mxu0 %v2559_v57 }
 0x584   :  { %v2563_v62 = vpack.c.bf16 %v2956_v59, %v2958_v60 }
 0x586   :  { %2564 = vmatprep.subr.bf16.mxu0 %v2563_v62 }
 0x587   :  { %2566 = vmatpush3.bf16.msra.mxu0 %v2563_v62 }
 0x588   :  { %2584 = vmatprep.subr.bf16.mxu0 %v2690_v18 }
 0x58a   :  { %2340 = vmatmul.mubr.msk.f32.vlgmr.msra.gmra.mrb[24].mxu0 %vm239_vm1, %v1900_v63 }
 0x58b   :  { %2586 = vmatpush3.bf16.msra.mxu0 %v2690_v18  ;;  %2342 = vmatprep.mubr.msk.f32.mxu0 %vm239_vm1, %v1901_v3  ;;  %v1904_v18 = vld [vmem:[%s3131_s1 + $0xe8] sm:$0xff]  ;;  %s2610_s1 = smov 32  }
 0x58c   :  { %2588 = vmatprep.subr.bf16.mxu0 %v2587_v5 }
 0x58e   :  { %2343 = vmatmul.mubr.msk.f32.gmra.mrb[26].mxu0 %vm239_vm1, %v1902_v6 }
 0x58f   :  { %2590 = vmatpush3.bf16.msra.mxu0 %v2587_v5  ;;  %2345 = vmatprep.mubr.msk.f32.mxu0 %vm239_vm1, %v1903_v7 }
 0x590   :  { %2600 = vmatprep.subr.bf16.mxu0 %v2782_v58 }
 0x592   :  { %2346 = vmatmul.mubr.msk.f32.gmra.mrb[28].mxu0 %vm239_vm1, %v1904_v18 }
 0x593   :  { %2348 = vmatprep.mubr.msk.f32.mxu0 %vm239_vm1, %v1905_v27 }
 0x596   :  { %2349 = vmatmul.mubr.msk.f32.gmra.mrb[30].mxu0 %vm239_vm1, %v1906_v29 }
 0x597   :  { %2387 = vmatprep.mubr.msk.f32.mxu0 %vm23_vm0, %v2864_v14 }
 0x59a   :  { %2388 = vmatmul.mubr.msk.f32.vlgmr.msra.gmra.mrb[32].mxu0 %vm23_vm0, %v2861_v8 }
 0x59b   :  { %2602 = vmatpush3.bf16.msra.mxu0 %v2782_v58  ;;  %2390 = vmatprep.mubr.msk.f32.mxu0 %vm23_vm0, %v2872_v24 }
 0x59c   :  { %2604 = vmatprep.subr.bf16.mxu0 %v2784_v61 }
 0x59e   :  { %2391 = vmatmul.mubr.msk.f32.gmra.mrb[34].mxu0 %vm23_vm0, %v2869_v23 }
 0x59f   :  { %2606 = vmatpush3.bf16.msra.mxu0 %v2784_v61  ;;  %2393 = vmatprep.mubr.msk.f32.mxu0 %vm23_vm0, %v2880_v35 }
 0x5a2   :  { %2394 = vmatmul.mubr.msk.f32.gmra.mrb[36].mxu0 %vm23_vm0, %v2877_v33 }
 0x5a3   :  { %2396 = vmatprep.mubr.msk.f32.mxu0 %vm23_vm0, %v2886_v44 }
 0x5a6   :  { %2397 = vmatmul.mubr.msk.f32.gmra.mrb[38].mxu0 %vm23_vm0, %v2884_v43 }
 0x65d   :  { %v2341_v58 = vpop.f32.mrb[24].mxu0 }
 0x65e   :  { %v1131_v8 = vpop.f32.mrb[25].mxu0 }
 0x65f   :  { %v2567_v14 = vpack.c.bf16 %v2341_v58, %v1131_v8 }
 0x661   :  { %v2344_v24 = vpop.f32.mrb[26].mxu0  ;;  %2568 = vmatprep.subr.bf16.mxu1 %v2567_v14 }
 0x662   :  { %v1141_v23 = vpop.f32.mrb[27].mxu0  ;;  %2570 = vmatpush3.bf16.msra.mxu1 %v2567_v14  ;;  %v1173_v38 = vadd.f32 %v2344_v24, %v2941_v20 }
 0x663   :  { %v2571_v61 = vpack.c.bf16 %v2344_v24, %v1141_v23  ;;  %v1172_v41 = vadd.f32 %v1141_v23, %v2944_v40 }
 0x665   :  { %v3014_v12 = vpop.f32.mrb[28].mxu0  ;;  %2572 = vmatprep.subr.bf16.mxu1 %v2571_v61 }
 0x666   :  { %v3016_v35 = vpop.f32.mrb[29].mxu0  ;;  %2574 = vmatpush3.bf16.msra.mxu1 %v2571_v61 }
 0x667   :  { %v2575_v33 = vpack.c.bf16 %v3014_v12, %v3016_v35 }
 0x669   :  { %v3020_v44 = vpop.f32.mrb[30].mxu0  ;;  %2576 = vmatprep.subr.bf16.mxu1 %v2575_v33 }
 0x66a   :  { %v3022_v43 = vpop.f32.mrb[31].mxu0  ;;  %2578 = vmatpush3.bf16.msra.mxu1 %v2575_v33  ;;  %v1177_v57 = vadd.f32 %v3020_v44, %v2956_v59 }
 0x66b   :  { %v2579_v15 = vpack.c.bf16 %v3020_v44, %v3022_v43 }
 0x66d   :  { %2580 = vmatprep.subr.bf16.mxu1 %v2579_v15  ;;  %v2389_v16 = vpop.f32.mrb[32].mxu0 }
 0x66e   :  { %1696 = vrot.lane.b32.xlu0 %v2389_v16, %s2610_s1  ;;  %2582 = vmatpush3.bf16.msra.mxu1 %v2579_v15  ;;  %v1389_v17 = vpop.f32.mrb[33].mxu0 }
 0x66f   :  { %2592 = vmatprep.subr.bf16.mxu1 %v2761_v39 }
 0x671   :  { %2368 = vmatmul.mubr.msk.f32.vlgmr.msra.gmra.mrb[32].mxu1 %vm239_vm1, %v1900_v63  ;;  %v2392_v1 = vpop.f32.mrb[34].mxu0 }
 0x672   :  { %1694 = vrot.lane.b32.xlu0 %v1389_v17, %s2610_s1  ;;  %1700 = vrot.lane.b32.xlu1 %v2392_v1, %s2610_s1  ;;  %v1399_v0 = vpop.f32.mrb[35].mxu0 }
 0x673   :  { %2594 = vmatpush3.bf16.msra.mxu1 %v2761_v39  ;;  %2370 = vmatprep.mubr.msk.f32.mxu1 %vm239_vm1, %v1901_v3  ;;  %v1171_v39 = vadd.f32 %v2341_v58, %v2933_v2 }
 0x674   :  { %2596 = vmatprep.subr.bf16.mxu1 %v2765_v42 }
 0x675   :  { %2371 = vmatmul.mubr.msk.f32.gmra.mrb[34].mxu1 %vm239_vm1, %v1902_v6  ;;  %v2395_v22 = vpop.f32.mrb[36].mxu0 }
 0x676   :  { %1698 = vrot.lane.b32.xlu1 %v1399_v0, %s2610_s1  ;;  %v1409_v25 = vpop.f32.mrb[37].mxu0  ;;  %2373 = vmatprep.mubr.msk.f32.mxu1 %vm239_vm1, %v1903_v7 }
 0x677   :  { %2598 = vmatpush3.bf16.msra.mxu1 %v2765_v42  ;;  %1702 = vrot.lane.b32.xlu0 %v1409_v25, %s2610_s1  ;;  %v1170_v42 = vadd.f32 %v1131_v8, %v2936_v26 }
 0x679   :  { %2374 = vmatmul.mubr.msk.f32.gmra.mrb[36].mxu1 %vm239_vm1, %v1904_v18  ;;  %v2398_v28 = vpop.f32.mrb[38].mxu0 }
 0x67a   :  { %1704 = vrot.lane.b32.xlu1 %v2395_v22, %s2610_s1  ;;  %v1419_v10 = vpop.f32.mrb[39].mxu0  ;;  %2376 = vmatprep.mubr.msk.f32.mxu1 %vm239_vm1, %v1905_v27 }
 0x67b   :  { %1706 = vrot.lane.b32.xlu0 %v1419_v10, %s2610_s1 }
 0x67d   :  { %2377 = vmatmul.mubr.msk.f32.gmra.mrb[38].mxu1 %vm239_vm1, %v1906_v29 }
 0x67e   :  { %1708 = vrot.lane.b32.xlu1 %v2398_v28, %s2610_s1  ;;  %2407 = vmatprep.mubr.msk.f32.mxu1 %vm23_vm0, %v2936_v26  ;;  %v1174_v26 = vadd.f32 %v3016_v35, %v2952_v52 }
 0x681   :  { %2408 = vmatmul.mubr.msk.f32.vlgmr.msra.gmra.mrb[40].mxu1 %vm23_vm0, %v2933_v2  ;;  %v1175_v2 = vadd.f32 %v3014_v12, %v2949_v50 }
 0x682   :  { %2410 = vmatprep.mubr.msk.f32.mxu1 %vm23_vm0, %v2944_v40 }
 0x685   :  { %2411 = vmatmul.mubr.msk.f32.gmra.mrb[42].mxu1 %vm23_vm0, %v2941_v20 }
 0x686   :  { %2413 = vmatprep.mubr.msk.f32.mxu1 %vm23_vm0, %v2952_v52 }
 0x689   :  { %2414 = vmatmul.mubr.msk.f32.gmra.mrb[44].mxu1 %vm23_vm0, %v2949_v50  ;;  %v1176_v50 = vadd.f32 %v3022_v43, %v2958_v60 }
 0x68a   :  { %2416 = vmatprep.mubr.msk.f32.mxu1 %vm23_vm0, %v2958_v60 }
 0x68d   :  { %2417 = vmatmul.mubr.msk.f32.gmra.mrb[46].mxu1 %vm23_vm0, %v2956_v59 }
 0x6e0   :  { %v1697_v17 = vpop.permute.xlu0 %1696 }
 0x6e4   :  { %v1701_v16 = vpop.permute.xlu1 %1700  ;;  %v1695_v0 = vpop.permute.xlu0 %1694 }
 0x6e8   :  { %v1699_v1 = vpop.permute.xlu1 %1698 }
 0x6e9   :  { %v1703_v25 = vpop.permute.xlu0 %1702 }
 0x6ec   :  { %v1705_v22 = vpop.permute.xlu1 %1704 }
 0x6ed   :  { %v1707_v10 = vpop.permute.xlu0 %1706 }
 0x6f0   :  { %v1709_v28 = vpop.permute.xlu1 %1708 }
 0x744   :  { %v2369_v9 = vpop.f32.mrb[32].mxu1 }
 0x745   :  { %v1284_v32 = vadd.f32 %v2369_v9, %v1171_v39  ;;  %v1244_v34 = vpop.f32.mrb[33].mxu1 }
 0x746   :  { %v1283_v19 = vadd.f32 %v1244_v34, %v1170_v42 }
 0x747   :  { %v1292_v47 = vmul.f32 0.33333334, %v1284_v32 }
 0x748   :  { %v1291_v45 = vmul.f32 0.33333334, %v1283_v19  ;;  %v2372_v46 = vpop.f32.mrb[34].mxu1 }
 0x749   :  { %v1286_v48 = vadd.f32 %v2372_v46, %v1173_v38  ;;  %v1254_v49 = vpop.f32.mrb[35].mxu1  ;;  %v1782_v46 = vsel %vm23_vm0, %v2792_v13, %v1695_v0  ;;  %v1784_v13 = vsel %vm23_vm0, %v2800_v4, %v1699_v1  ;;  %v1786_v4 = vsel %vm23_vm0, %v2808_v31, %v1703_v25 }
 0x74a   :  { %v1285_v51 = vadd.f32 %v1254_v49, %v1172_v41  ;;  %2427 = vmatprep.mubr.msk.f32.mxu0 %vm23_vm0, %v1291_v45  ;;  %v1783_v45 = vsel %vm23_vm0, %v2789_v11, %v1697_v17  ;;  %v1785_v11 = vsel %vm23_vm0, %v2797_v21, %v1701_v16  ;;  %v1788_v31 = vsel %vm23_vm0, %v2814_v37, %v1707_v10 }
 0x74b   :  { %2428 = vmatmul.mubr.msk.f32.vlgmr.msra.gmra.mrb[40].mxu0 %vm23_vm0, %v1292_v47  ;;  %v1294_v54 = vmul.f32 0.33333334, %v1286_v48 }
 0x74c   :  { %v1293_v53 = vmul.f32 0.33333334, %v1285_v51  ;;  %v2375_v20 = vpop.f32.mrb[36].mxu1 }
 0x74d   :  { %v1288_v40 = vadd.f32 %v2375_v20, %v1175_v2  ;;  %v1264_v55 = vpop.f32.mrb[37].mxu1 }
 0x74e   :  { %v1287_v56 = vadd.f32 %v1264_v55, %v1174_v26  ;;  %2430 = vmatprep.mubr.msk.f32.mxu0 %vm23_vm0, %v1293_v53 }
 0x74f   :  { %2431 = vmatmul.mubr.msk.f32.gmra.mrb[42].mxu0 %vm23_vm0, %v1294_v54  ;;  %v1296_v3 = vmul.f32 0.33333334, %v1288_v40 }
 0x750   :  { %v1295_v62 = vmul.f32 0.33333334, %v1287_v56  ;;  %v2378_v63 = vpop.f32.mrb[38].mxu1  ;;  %v1787_v56 = vsel %vm23_vm0, %v2805_v30, %v1705_v22 }
 0x751   :  { %v1290_v52 = vadd.f32 %v2378_v63, %v1177_v57  ;;  %v1274_v5 = vpop.f32.mrb[39].mxu1 }
 0x752   :  { %v1289_v6 = vadd.f32 %v1274_v5, %v1176_v50  ;;  %2433 = vmatprep.mubr.msk.f32.mxu0 %vm23_vm0, %v1295_v62 }
 0x753   :  { %2434 = vmatmul.mubr.msk.f32.gmra.mrb[44].mxu0 %vm23_vm0, %v1296_v3  ;;  %v1298_v27 = vmul.f32 0.33333334, %v1290_v52  ;;  %v1789_v52 = vsel %vm23_vm0, %v2812_v36, %v1709_v28 }
 0x754   :  { %v1297_v7 = vmul.f32 0.33333334, %v1289_v6  ;;  %v2409_v18 = vpop.f32.mrb[40].mxu1 }
 0x755   :  { %1728 = vrot.lane.b32.xlu1 %v2409_v18, %s2611_s2  ;;  %v1518_v59 = vpop.f32.mrb[41].mxu1 }
 0x756   :  { %1726 = vrot.lane.b32.xlu0 %v1518_v59, %s2611_s2  ;;  %2436 = vmatprep.mubr.msk.f32.mxu0 %vm23_vm0, %v1297_v7 }
 0x757   :  { %2437 = vmatmul.mubr.msk.f32.gmra.mrb[46].mxu0 %vm23_vm0, %v1298_v27 }
 0x758   :  { %v2412_v60 = vpop.f32.mrb[42].mxu1 }
 0x759   :  { %1732 = vrot.lane.b32.xlu1 %v2412_v60, %s2611_s2  ;;  %v1528_v29 = vpop.f32.mrb[43].mxu1 }
 0x75a   :  { %1730 = vrot.lane.b32.xlu0 %v1528_v29, %s2611_s2 }
 0x75c   :  { %v2415_v58 = vpop.f32.mrb[44].mxu1 }
 0x75d   :  { %1736 = vrot.lane.b32.xlu1 %v2415_v58, %s2611_s2  ;;  %v1538_v8 = vpop.f32.mrb[45].mxu1 }
 0x75e   :  { %1734 = vrot.lane.b32.xlu0 %v1538_v8, %s2611_s2 }
 0x760   :  { %v2418_v14 = vpop.f32.mrb[46].mxu1 }
 0x761   :  { %1740 = vrot.lane.b32.xlu1 %v2418_v14, %s2611_s2  ;;  %v1548_v24 = vpop.f32.mrb[47].mxu1 }
 0x762   :  { %1738 = vrot.lane.b32.xlu0 %v1548_v24, %s2611_s2 }
 0x7c7   :  { %v1729_v39 = vpop.permute.xlu1 %1728 }
 0x7c8   :  { %v1727_v42 = vpop.permute.xlu0 %1726  ;;  %v1791_v47 = vsel %vm239_vm1, %v1783_v45, %v1729_v39 }
 0x7c9   :  { %v1790_v49 = vsel %vm239_vm1, %v1782_v46, %v1727_v42 }
 0x7cb   :  { %v1733_v9 = vpop.permute.xlu1 %1732 }
 0x7cc   :  { %v1731_v32 = vpop.permute.xlu0 %1730  ;;  %v1793_v53 = vsel %vm239_vm1, %v1785_v11, %v1733_v9 }
 0x7cd   :  { %v1792_v54 = vsel %vm239_vm1, %v1784_v13, %v1731_v32 }
 0x7cf   :  { %v1737_v34 = vpop.permute.xlu1 %1736 }
 0x7d0   :  { %v1735_v19 = vpop.permute.xlu0 %1734  ;;  %v1795_v57 = vsel %vm239_vm1, %v1787_v56, %v1737_v34 }
 0x7d1   :  { %v1794_v62 = vsel %vm239_vm1, %v1786_v4, %v1735_v19 }
 0x7d3   :  { %v1741_v38 = vpop.permute.xlu1 %1740 }
 0x7d4   :  { %v1739_v41 = vpop.permute.xlu0 %1738  ;;  %v1797_v5 = vsel %vm239_vm1, %v1789_v52, %v1741_v38 }
 0x7d5   :  { %v1796_v7 = vsel %vm239_vm1, %v1788_v31, %v1739_v41 }
 0x81e   :  { %v2429_v23 = vpop.f32.mrb[40].mxu0 }
 0x81f   :  { %v1647_v61 = vpop.f32.mrb[41].mxu0  ;;  %1760 = vrot.lane.b32.xlu1 %v2429_v23, %s2612_s30 }
 0x820   :  { %1758 = vrot.lane.b32.xlu0 %v1647_v61, %s2612_s30 }
 0x822   :  { %v2432_v12 = vpop.f32.mrb[42].mxu0 }
 0x823   :  { %v1657_v35 = vpop.f32.mrb[43].mxu0  ;;  %1764 = vrot.lane.b32.xlu1 %v2432_v12, %s2612_s30 }
 0x824   :  { %1762 = vrot.lane.b32.xlu0 %v1657_v35, %s2612_s30 }
 0x826   :  { %v2435_v33 = vpop.f32.mrb[44].mxu0 }
 0x827   :  { %v1667_v44 = vpop.f32.mrb[45].mxu0  ;;  %1768 = vrot.lane.b32.xlu1 %v2435_v33, %s2612_s30 }
 0x828   :  { %1766 = vrot.lane.b32.xlu0 %v1667_v44, %s2612_s30 }
 0x82a   :  { %v2438_v43 = vpop.f32.mrb[46].mxu0 }
 0x82b   :  { %1772 = vrot.lane.b32.xlu1 %v2438_v43, %s2612_s30  ;;  %v1677_v15 = vpop.f32.mrb[47].mxu0 }
 0x82c   :  { %1770 = vrot.lane.b32.xlu0 %v1677_v15, %s2612_s30 }
 0x891   :  { %v1761_v48 = vpop.permute.xlu1 %1760 }
 0x892   :  { %v1800_v51 = vsel %vm1798_vm2, %v1791_v47, %v1761_v48  ;;  %v1759_v2 = vpop.permute.xlu0 %1758 }
 0x893   :  { %1808 = vst [vmem:[%s3132_s3 + $0x8] sm:$0xff] %v1800_v51  ;;  %v1799_v26 = vsel %vm1798_vm2, %v1790_v49, %v1759_v2 }
 0x894   :  { %1807 = vst [vmem:[%s3132_s3] sm:$0xff] %v1799_v26 }
 0x895   :  { %v1765_v20 = vpop.permute.xlu1 %1764 }
 0x896   :  { %v1802_v40 = vsel %vm1798_vm2, %v1793_v53, %v1765_v20  ;;  %v1763_v55 = vpop.permute.xlu0 %1762 }
 0x897   :  { %1810 = vst [vmem:[%s3132_s3 + $0x18] sm:$0xff] %v1802_v40  ;;  %v1801_v21 = vsel %vm1798_vm2, %v1792_v54, %v1763_v55 }
 0x898   :  { %1809 = vst [vmem:[%s3132_s3 + $0x10] sm:$0xff] %v1801_v21 }
 0x899   :  { %v1769_v50 = vpop.permute.xlu1 %1768 }
 0x89a   :  { %v1804_v63 = vsel %vm1798_vm2, %v1795_v57, %v1769_v50  ;;  %v1767_v3 = vpop.permute.xlu0 %1766 }
 0x89b   :  { %1812 = vst [vmem:[%s3132_s3 + $0x28] sm:$0xff] %v1804_v63  ;;  %v1803_v30 = vsel %vm1798_vm2, %v1794_v62, %v1767_v3 }
 0x89c   :  { %1811 = vst [vmem:[%s3132_s3 + $0x20] sm:$0xff] %v1803_v30 }
 0x89d   :  { %v1773_v6 = vpop.permute.xlu1 %1772 }
 0x89e   :  { %v1806_v18 = vsel %vm1798_vm2, %v1797_v5, %v1773_v6  ;;  %v1771_v27 = vpop.permute.xlu0 %1770 }
 0x89f   :  { %1814 = vst [vmem:[%s3132_s3 + $0x38] sm:$0xff] %v1806_v18  ;;  %v1805_v36 = vsel %vm1798_vm2, %v1796_v7, %v1771_v27 }
 0x8a0   :  { %1813 = vst [vmem:[%s3132_s3 + $0x30] sm:$0xff] %v1805_v36 }

</bundles_post_ra>
